<compile_context>
chip_gen: v6e
topology: v6e:2x2x1
jax: 0.10.0
libtpu: 0.0.40
codegen_flags: <defaults>
</compile_context>

<pallas_src>
import jax
import jax.numpy as jnp
from jax.experimental import pallas as pl
from jax.experimental.pallas import tpu as pltpu


def _round_up(x, m):
    return ((x + m - 1) // m) * m


def _make_kernel(precision):
    def _classification_kernel(x_ref, theta_ref, bias_ref, out_ref, acc_ref):
        k = pl.program_id(1)

        @pl.when(k == 0)
        def _():
            acc_ref[...] = jnp.zeros_like(acc_ref)

        # MXU matmul, f32 accumulation.  For f32 operands `precision` selects the
        # multi-pass (near-exact) decomposition; bf16 operands use the native path.
        acc_ref[...] += jnp.dot(
            x_ref[...], theta_ref[...],
            preferred_element_type=jnp.float32,
            precision=precision,
        )

        @pl.when(k == pl.num_programs(1) - 1)
        def _():
            logits = acc_ref[...] + bias_ref[...]          # (tile_b, C_pad), f32
            m = jnp.max(logits, axis=-1, keepdims=True)
            e = jnp.exp(logits - m)
            denom = jnp.sum(e, axis=-1, keepdims=True)
            out_ref[...] = (e * pl.reciprocal(denom)).astype(out_ref.dtype)

    return _classification_kernel


def classification_layer(x, theta, bias, *, tile_b=512, tile_k=512, out_dtype=None):
    """softmax(x @ theta + bias, axis=1).  x: (B, D), theta: (D, C), bias: (C,)."""
    B, D = x.shape
    Dt, C = theta.shape
    assert D == Dt and bias.shape == (C,)
    out_dtype = jnp.dtype(out_dtype or x.dtype)

    # f32 inputs -> exact-ish matmul (matches the PyTorch fp32 semantics);
    # bf16/fp8 inputs -> native single-pass MXU.
    if jnp.dtype(x.dtype) == jnp.float32 and jnp.dtype(theta.dtype) == jnp.float32:
        precision = jax.lax.Precision.HIGHEST
    else:
        precision = None

    # Lane-dense class dim: pad to a multiple of 128.
    C_pad = _round_up(C, 128)
    # Batch tile: fixed tile, rounded to 16 (covers f32 and bf16 sublane packing).
    tb = min(tile_b, _round_up(B, 16))
    B_pad = _round_up(B, tb)
    # K tile: single full-D block when small, tile_k-aligned blocks when big.
    if D > tile_k:
        tk = tile_k
        D_pad = _round_up(D, tk)
    else:
        tk = D
        D_pad = D

    xp = x
    if (B_pad, D_pad) != (B, D):
        xp = jnp.pad(x, ((0, B_pad - B), (0, D_pad - D)))
    thp = theta
    if (D_pad, C_pad) != (D, C):
        thp = jnp.pad(theta, ((0, D_pad - D), (0, C_pad - C)))
    bias2d = bias.astype(jnp.float32).reshape(1, C)
    if C_pad != C:
        # -1e30 on padded classes -> exp(pad - max) == 0, softmax over real classes unchanged.
        bias2d = jnp.pad(bias2d, ((0, 0), (0, C_pad - C)), constant_values=-1e30)

    grid = (B_pad // tb, D_pad // tk)

    cost = pl.CostEstimate(
        flops=2 * B_pad * D_pad * C_pad,
        transcendentals=B_pad * C_pad,
        bytes_accessed=(xp.size * xp.dtype.itemsize
                        + grid[0] * thp.size * thp.dtype.itemsize
                        + bias2d.size * 4
                        + B_pad * C_pad * out_dtype.itemsize),
    )

    out_pad = pl.pallas_call(
        _make_kernel(precision),
        out_shape=jax.ShapeDtypeStruct((B_pad, C_pad), out_dtype),
        grid_spec=pltpu.PrefetchScalarGridSpec(
            num_scalar_prefetch=0,
            grid=grid,
            in_specs=[
                pl.BlockSpec((tb, tk), lambda i, k: (i, k)),      # x: batch x K tile
                pl.BlockSpec((tk, C_pad), lambda i, k: (k, 0)),   # theta: K slab
                pl.BlockSpec((1, C_pad), lambda i, k: (0, 0)),    # bias: resident
            ],
            out_specs=pl.BlockSpec((tb, C_pad), lambda i, k: (i, 0)),
            scratch_shapes=[pltpu.VMEM((tb, C_pad), jnp.float32)],
        ),
        compiler_params=pltpu.CompilerParams(
            dimension_semantics=("parallel", "arbitrary"),
        ),
        cost_estimate=cost,
    )(xp, thp, bias2d)

    return out_pad[:B, :C]


def _reference(x, theta, bias):
    logits = jnp.dot(x, theta, precision=jax.lax.Precision.HIGHEST) + bias
    return jax.nn.softmax(logits, axis=1)


if __name__ == "__main__":
    # Shapes consistent with the PyTorch module: (batch, input_dim) -> n_class=19.
    batch, input_dim, n_class = 8, 32, 19
    kx, kt, kb = jax.random.split(jax.random.PRNGKey(0), 3)
    x = jax.random.normal(kx, (batch, input_dim), dtype=jnp.float32)
    theta = jax.random.uniform(kt, (input_dim, n_class), dtype=jnp.float32) - 0.5
    bias = jax.random.uniform(kb, (n_class,), dtype=jnp.float32) - 0.5

    out = jax.block_until_ready(classification_layer(x, theta, bias))
    ref = _reference(x, theta, bias)
    assert out.shape == (batch, n_class)
    assert jnp.allclose(out, ref, atol=2e-3, rtol=0), float(jnp.max(jnp.abs(out - ref)))
    assert jnp.allclose(jnp.sum(out, axis=1), 1.0, atol=2e-3)

    # Second shape exercising ragged-batch padding, class padding and K tiling (2 K steps).
    B2, D2 = 130, 1024
    k2x, k2t, k2b = jax.random.split(jax.random.PRNGKey(1), 3)
    x2 = jax.random.normal(k2x, (B2, D2), dtype=jnp.float32)
    t2 = jax.random.uniform(k2t, (D2, n_class), dtype=jnp.float32) - 0.5
    b2 = jax.random.uniform(k2b, (n_class,), dtype=jnp.float32) - 0.5
    out2 = jax.block_until_ready(classification_layer(x2, t2, b2))
    ref2 = _reference(x2, t2, b2)
    assert out2.shape == (B2, n_class)
    assert jnp.allclose(out2, ref2, atol=2e-3, rtol=0), float(jnp.max(jnp.abs(out2 - ref2)))
    assert jnp.allclose(jnp.sum(out2, axis=1), 1.0, atol=2e-3)

    print("KERNEL_OK")
</pallas_src>

<mosaic_0001>
module attributes {stable_mosaic.version = 11 : i64} {
  func.func @_classification_kernel(%arg0: i32, %arg1: i32, %arg2: memref<16x32xf32, #tpu.memory_space<vmem>>, %arg3: memref<32x128xf32, #tpu.memory_space<vmem>>, %arg4: memref<1x128xf32, #tpu.memory_space<vmem>>, %arg5: memref<16x128xf32, #tpu.memory_space<vmem>>, %arg6: memref<16x128xf32, #tpu.memory_space<vmem>>) attributes {dimension_semantics = [#tpu.dimension_semantics<parallel>, #tpu.dimension_semantics<arbitrary>], iteration_bounds = array<i64: 1, 1>, scalar_prefetch = 0 : i64, scratch_operands = 1 : i64, tpu.core_type = #tpu.core_type<tc>, window_params = [{transform_indices = @transform_0, window_bounds = array<i64: 16, 32>}, {transform_indices = @transform_1, window_bounds = array<i64: 32, 128>}, {pipeline_mode = #tpu.pipeline_mode<synchronous>, transform_indices = @transform_2, window_bounds = array<i64: 1, 128>}, {transform_indices = @transform_3, window_bounds = array<i64: 16, 128>}]} {
    %c0_i32 = arith.constant 0 : i32
    %0 = arith.cmpi eq, %arg1, %c0_i32 : i32
    %1 = arith.extui %0 : i1 to i32
    %c0_i32_0 = arith.constant 0 : i32
    %2 = arith.cmpi ne, %1, %c0_i32_0 : i32
    scf.if %2 {
      %cst_10 = arith.constant 0.000000e+00 : f32
      %12 = vector.broadcast %cst_10 : f32 to vector<16x128xf32>
      %c0_11 = arith.constant 0 : index
      %c0_12 = arith.constant 0 : index
      %13 = vector.load %arg6[%c0_11, %c0_12] : memref<16x128xf32, #tpu.memory_space<vmem>>, vector<16x128xf32>
      tpu.vector_store %arg6[%c0_11, %c0_12], %12 {strides = array<i32>} : memref<16x128xf32, #tpu.memory_space<vmem>>, vector<16x128xf32>,
    } else {
    }
    %c0 = arith.constant 0 : index
    %c0_1 = arith.constant 0 : index
    %3 = vector.load %arg6[%c0, %c0_1] : memref<16x128xf32, #tpu.memory_space<vmem>>, vector<16x128xf32>
    %c0_2 = arith.constant 0 : index
    %c0_3 = arith.constant 0 : index
    %4 = vector.load %arg2[%c0_2, %c0_3] : memref<16x32xf32, #tpu.memory_space<vmem>>, vector<16x32xf32>
    %c0_4 = arith.constant 0 : index
    %c0_5 = arith.constant 0 : index
    %5 = vector.load %arg3[%c0_4, %c0_5] : memref<32x128xf32, #tpu.memory_space<vmem>>, vector<32x128xf32>
    %cst = arith.constant dense<0.000000e+00> : vector<16x128xf32>
    %6 = tpu.matmul %4, %5, %cst {dimension_numbers = #tpu.dot_dimension_numbers<[1], [0], [0], [1], [0, 0, 1, 1], [], []>, precision = #tpu.contract_precision<fp32>} : vector<16x32xf32>, vector<32x128xf32>, vector<16x128xf32> -> vector<16x128xf32>
    %7 = arith.addf %3, %6 : vector<16x128xf32>
    %c0_6 = arith.constant 0 : index
    %c0_7 = arith.constant 0 : index
    %8 = vector.load %arg6[%c0_6, %c0_7] : memref<16x128xf32, #tpu.memory_space<vmem>>, vector<16x128xf32>
    tpu.vector_store %arg6[%c0_6, %c0_7], %7 {strides = array<i32>} : memref<16x128xf32, #tpu.memory_space<vmem>>, vector<16x128xf32>,
    %c0_i32_8 = arith.constant 0 : i32
    %9 = arith.cmpi eq, %arg1, %c0_i32_8 : i32
    %10 = arith.extui %9 : i1 to i32
    %c0_i32_9 = arith.constant 0 : i32
    %11 = arith.cmpi ne, %10, %c0_i32_9 : i32
    scf.if %11 {
      %c0_10 = arith.constant 0 : index
      %c0_11 = arith.constant 0 : index
      %12 = vector.load %arg6[%c0_10, %c0_11] : memref<16x128xf32, #tpu.memory_space<vmem>>, vector<16x128xf32>
      %c0_12 = arith.constant 0 : index
      %c0_13 = arith.constant 0 : index
      %13 = vector.load %arg4[%c0_12, %c0_13] : memref<1x128xf32, #tpu.memory_space<vmem>>, vector<1x128xf32>
      %14 = vector.broadcast %13 : vector<1x128xf32> to vector<16x128xf32>
      %15 = arith.addf %12, %14 : vector<16x128xf32>
      %cst_14 = arith.constant dense<0xFF800000> : vector<16xf32>
      %16 = vector.multi_reduction <maximumf>, %15, %cst_14 [1] : vector<16x128xf32> to vector<16xf32>
      %17 = vector.shape_cast %16 : vector<16xf32> to vector<16x1xf32>
      %18 = vector.broadcast %17 : vector<16x1xf32> to vector<16x128xf32>
      %19 = arith.subf %15, %18 : vector<16x128xf32>
      %20 = math.exp %19 : vector<16x128xf32>
      %cst_15 = arith.constant dense<0.000000e+00> : vector<16xf32>
      %21 = vector.multi_reduction <add>, %20, %cst_15 [1] : vector<16x128xf32> to vector<16xf32>
      %22 = vector.shape_cast %21 : vector<16xf32> to vector<16x1xf32>
      %23 = tpu.reciprocal %22 : vector<16x1xf32> -> vector<16x1xf32>
      %24 = vector.broadcast %23 : vector<16x1xf32> to vector<16x128xf32>
      %25 = arith.mulf %20, %24 : vector<16x128xf32>
      %c0_16 = arith.constant 0 : index
      %c0_17 = arith.constant 0 : index
      %26 = vector.load %arg5[%c0_16, %c0_17] : memref<16x128xf32, #tpu.memory_space<vmem>>, vector<16x128xf32>
      tpu.vector_store %arg5[%c0_16, %c0_17], %25 {strides = array<i32>} : memref<16x128xf32, #tpu.memory_space<vmem>>, vector<16x128xf32>,
    } else {
    }
    return
  }
  func.func @transform_0(%arg0: i32, %arg1: i32) -> (i32, i32) {
    %c0_i32 = arith.constant 0 : i32
    return %arg0, %arg1 : i32, i32
  }
  func.func @transform_1(%arg0: i32, %arg1: i32) -> (i32, i32) {
    %c0_i32 = arith.constant 0 : i32
    %c0_i32_0 = arith.constant 0 : i32
    return %arg1, %c0_i32 : i32, i32
  }
  func.func @transform_2(%arg0: i32, %arg1: i32) -> (i32, i32) {
    %c0_i32 = arith.constant 0 : i32
    %c0_i32_0 = arith.constant 0 : i32
    %c0_i32_1 = arith.constant 0 : i32
    return %c0_i32, %c0_i32_0 : i32, i32
  }
  func.func @transform_3(%arg0: i32, %arg1: i32) -> (i32, i32) {
    %c0_i32 = arith.constant 0 : i32
    %c0_i32_0 = arith.constant 0 : i32
    return %arg0, %c0_i32 : i32, i32
  }
}

</mosaic_0001>

<bundles_post_ra>
// kernel: tpu_custom_call.1
= control target key start
LH: loop header
LB: loop body
LE: loop exit
PB: predicated region body
PF: predicated region fallthrough
CT: control target
= control target key end

     0   :  { %8 = vsyncpa [#allocation4], 0  ;;  %s924_s0 = inlined_call_operand.hbm [shape: f32[16,32], index: 0, kind: input, shape index: {}]   ;;  %s925_s1 = inlined_call_operand.hbm [shape: f32[32,128], index: 1, kind: input, shape index: {}]   ;;  %s926_s2 = inlined_call_operand.vmem [shape: f32[1,128], index: 2, kind: input, shape index: {}]   ;;  %s927_s3 = inlined_call_operand.hbm [shape: f32[16,128], index: 3, kind: output, shape index: {}]  }
   0x1   :  { %9 = vsyncpa [#allocation7], 0 }
   0x2   :  { %10 = vsyncpa [#allocation5], 0  ;;  %s830_s12 = smov [#allocation3]  }
   0x3   :  { %s16_s13 = sshll.u32 %s830_s12, 4  ;;  %s17_s13 = int_to_ptr.vmem [resolvable:$true] %s16_s13 }
   0x4   :  { %s772_s14 = scalar_lea.vmem %s17_s13, 256  ;;  %p777_p1 = scmp.lt.s32.totalorder %s17_s13, %s17_s13 }
   0x5   :  { %p773_p0 = scmp.ne.s32.totalorder %s17_s13, %s772_s14  ;;  %p778_p2 = scmp.lt.s32.totalorder %s772_s14, %s772_s14 }
   0x7   :  { %p779_p3 = por %p778_p2, %p777_p1 }
   0x9   :  { %p780_p4 = pnand %p779_p3, %p773_p0 }
   0xb   :  { %783 = shalt.err (!%p780_p4)
}
   0xc   :  { %s831_s15 = smov 128   ;;  %s832_s16 = smov 8  }
   0xd   :  { %22 = dma.hbm_to_vmem [thread:$0]  %s924_s0, 256, %s17_s13, [#allocation4], %s831_s15, %s831_s15, %s832_s16  }
   0xe   :  { %s833_s19 = smov [#allocation6]  }
   0xf   :  { %s28_s20 = sshll.u32 %s833_s19, 4  ;;  %s29_s20 = int_to_ptr.vmem [resolvable:$true] %s28_s20 }
  0x10   :  { %s792_s21 = scalar_lea.vmem %s29_s20, 512  ;;  %p797_p6 = scmp.lt.s32.totalorder %s29_s20, %s29_s20 }
  0x11   :  { %p793_p5 = scmp.ne.s32.totalorder %s29_s20, %s792_s21  ;;  %p798_p7 = scmp.lt.s32.totalorder %s792_s21, %s792_s21 }
  0x13   :  { %p799_p8 = por %p798_p7, %p797_p6 }
  0x15   :  { %p800_p9 = pnand %p799_p8, %p793_p5 }
  0x17   :  { %803 = shalt.err (!%p800_p9)
}
  0x18   :  { %34 = dma.hbm_to_vmem [thread:$0]  %s925_s1, 512, %s29_s20, [#allocation7], %s831_s15, %s831_s15, %s832_s16  }
  0x19   :  { %824 = dma.done.wait [#allocation4], 256  }
  0x1a   :  { %825 = vsyncadd [#allocation4], 4294967040 }
  0x1b   :  { %826 = dma.done.wait [#allocation7], 512  }
  0x1c   :  { %827 = vsyncadd [#allocation7], 4294966784  ;;  %vm57_vm0 = vcmask 261120   ;;  %v56_v0 = vld [vmem:[#allocation6 + $0x18] sm:$0xff]  ;;  %v55_v1 = vld [vmem:[#allocation6 + $0x10] sm:$0xff] }
  0x1d   :  { %v54_v2 = vld [vmem:[#allocation6 + $0x8] sm:$0xff]  ;;  %v867_v3 = vand.u32 4294901760, %v56_v0  ;;  %v869_v4 = vand.u32 4294901760, %v55_v1  ;;  %v53_v6 = vld [vmem:[#allocation6] sm:$0xff]  ;;  %v51_v7 = vld [vmem:[#allocation3] sm:$0xff] }
  0x1e   :  { %v871_v5 = vand.u32 4294901760, %v54_v2  ;;  %v52_v8 = vld [vmem:[#allocation3 + $0x8] sm:$0xff]  ;;  %v873_v9 = vand.u32 4294901760, %v53_v6  ;;  %v59_v10 = vsel %vm57_vm0, %v51_v7, 0  ;;  %v648_v59 = vld [vmem:[%s926_s2] ss:$0 sm:$0xff] }
  0x1f   :  { %v62_v11 = vsel %vm57_vm0, %v52_v8, 0  ;;  %685 = vmatprep.subr.mxu0 %v867_v3  ;;  %v179_v12 = vsub.f32 %v56_v0, %v867_v3  ;;  %v877_v13 = vand.u32 4294901760, %v59_v10  ;;  %v186_v15 = vsub.f32 %v55_v1, %v869_v4  ;;  %s834_s2 = smov [#allocation8]  }
  0x20   :  { %v879_v14 = vand.u32 4294901760, %v62_v11  ;;  %686 = vmatpush3.msra.mxu0 %v867_v3  ;;  %v193_v16 = vsub.f32 %v54_v2, %v871_v5  ;;  %v200_v17 = vsub.f32 %v53_v6, %v873_v9  ;;  %s635_s24 = sshll.u32 %s834_s2, 4  ;;  %s636_s24 = int_to_ptr.vmem [resolvable:$true] %s635_s24 }
  0x21   :  { %687 = vmatprep.subr.mxu0 %v869_v4  ;;  %v180_v18 = vand.u32 4294901760, %v179_v12  ;;  %v134_v19 = vsub.f32 %v59_v10, %v877_v13  ;;  %v187_v20 = vand.u32 4294901760, %v186_v15  ;;  %704 = vmatprep.mubr.f32.mxu1 %v877_v13  ;;  %s804_s25 = scalar_lea.vmem %s636_s24, 256  ;;  %p809_p11 = scmp.lt.s32.totalorder %s636_s24, %s636_s24 }
  0x22   :  { %v144_v21 = vsub.f32 %v62_v11, %v879_v14  ;;  %688 = vmatpush3.msra.mxu0 %v869_v4  ;;  %v194_v22 = vand.u32 4294901760, %v193_v16  ;;  %v201_v23 = vand.u32 4294901760, %v200_v17  ;;  %p805_p10 = scmp.ne.s32.totalorder %s636_s24, %s804_s25  ;;  %p810_p12 = scmp.lt.s32.totalorder %s804_s25, %s804_s25 }
  0x23   :  { %689 = vmatprep.subr.mxu0 %v871_v5  ;;  %v181_v24 = vsub.f32 %v179_v12, %v180_v18  ;;  %v135_v25 = vand.u32 4294901760, %v134_v19  ;;  %v188_v26 = vsub.f32 %v186_v15, %v187_v20 }
  0x24   :  { %v145_v27 = vand.u32 4294901760, %v144_v21  ;;  %690 = vmatpush3.msra.mxu0 %v871_v5  ;;  %v195_v28 = vsub.f32 %v193_v16, %v194_v22  ;;  %v202_v29 = vsub.f32 %v200_v17, %v201_v23  ;;  %p811_p13 = por %p810_p12, %p809_p11 }
  0x25   :  { %691 = vmatprep.subr.mxu0 %v873_v9  ;;  %v182_v30 = vand.u32 4294901760, %v181_v24  ;;  %v136_v31 = vsub.f32 %v134_v19, %v135_v25  ;;  %v189_v32 = vand.u32 4294901760, %v188_v26 }
  0x26   :  { %v146_v33 = vsub.f32 %v144_v21, %v145_v27  ;;  %692 = vmatpush3.msra.mxu0 %v873_v9  ;;  %v196_v36 = vand.u32 4294901760, %v195_v28  ;;  %v203_v37 = vand.u32 4294901760, %v202_v29  ;;  %p812_p0 = pnand %p811_p13, %p805_p10 }
  0x27   :  { %696 = vmatprep.subr.mxu1 %v182_v30  ;;  %v137_v34 = vand.u32 4294901760, %v136_v31  ;;  %707 = vmatprep.subr.mxu0 %v179_v12 }
  0x28   :  { %v147_v35 = vand.u32 4294901760, %v146_v33  ;;  %697 = vmatpush3.msra.mxu1 %v182_v30 }
  0x29   :  { %693 = vmatprep.mubr.f32.mxu0 %v137_v34  ;;  %698 = vmatprep.subr.mxu1 %v189_v32 }
  0x2a   :  { %694 = vmatmul.mubr.f32.vlgmr.msra.gmra.mxu0 %v147_v35  ;;  %699 = vmatpush3.msra.mxu1 %v189_v32 }
  0x2b   :  { %708 = vmatpush3.msra.mxu0 %v179_v12  ;;  %700 = vmatprep.subr.mxu1 %v196_v36 }
  0x2c   :  { %709 = vmatprep.subr.mxu0 %v186_v15  ;;  %701 = vmatpush3.msra.mxu1 %v196_v36 }
  0x2d   :  { %710 = vmatpush3.msra.mxu0 %v186_v15  ;;  %702 = vmatprep.subr.mxu1 %v203_v37 }
  0x2e   :  { %711 = vmatprep.subr.mxu0 %v193_v16  ;;  %703 = vmatpush3.msra.mxu1 %v203_v37 }
  0x2f   :  { %712 = vmatpush3.msra.mxu0 %v193_v16  ;;  %705 = vmatmul.mubr.f32.vlgmr.msra.gmra.mxu1 %v879_v14 }
  0x30   :  { %713 = vmatprep.subr.mxu0 %v200_v17  ;;  %718 = vmatprep.subr.mxu1 %v867_v3 }
  0x31   :  { %714 = vmatpush3.msra.mxu0 %v200_v17  ;;  %715 = vmatprep.mubr.f32.mxu0 %v134_v19 }
  0x32   :  { %719 = vmatpush3.msra.mxu1 %v867_v3  ;;  %716 = vmatmul.mubr.f32.vlgmr.msra.gmra.mxu0 %v144_v21 }
  0x33   :  { %720 = vmatprep.subr.mxu1 %v869_v4  ;;  %729 = vmatprep.subr.mxu0 %v180_v18 }
  0x34   :  { %721 = vmatpush3.msra.mxu1 %v869_v4  ;;  %730 = vmatpush3.msra.mxu0 %v180_v18 }
  0x35   :  { %722 = vmatprep.subr.mxu1 %v871_v5  ;;  %731 = vmatprep.subr.mxu0 %v187_v20 }
  0x36   :  { %723 = vmatpush3.msra.mxu1 %v871_v5  ;;  %732 = vmatpush3.msra.mxu0 %v187_v20 }
  0x37   :  { %724 = vmatprep.subr.mxu1 %v873_v9  ;;  %733 = vmatprep.subr.mxu0 %v194_v22 }
  0x38   :  { %725 = vmatpush3.msra.mxu1 %v873_v9  ;;  %726 = vmatprep.mubr.f32.mxu1 %v135_v25 }
  0x39   :  { %734 = vmatpush3.msra.mxu0 %v194_v22  ;;  %727 = vmatmul.mubr.f32.vlgmr.msra.gmra.mxu1 %v145_v27 }
  0x3a   :  { %735 = vmatprep.subr.mxu0 %v201_v23  ;;  %740 = vmatprep.subr.mxu1 %v867_v3 }
  0x3b   :  { %736 = vmatpush3.msra.mxu0 %v201_v23  ;;  %737 = vmatprep.mubr.f32.mxu0 %v877_v13 }
  0x3c   :  { %741 = vmatpush3.msra.mxu1 %v867_v3  ;;  %738 = vmatmul.mubr.f32.vlgmr.msra.gmra.mxu0 %v879_v14 }
  0x3d   :  { %742 = vmatprep.subr.mxu1 %v869_v4  ;;  %748 = vmatprep.mubr.f32.mxu1 %v877_v13 }
  0x3e   :  { %743 = vmatpush3.msra.mxu1 %v869_v4 }
  0x3f   :  { %744 = vmatprep.subr.mxu1 %v871_v5 }
  0x40   :  { %745 = vmatpush3.msra.mxu1 %v871_v5 }
  0x41   :  { %746 = vmatprep.subr.mxu1 %v873_v9 }
  0x42   :  { %747 = vmatpush3.msra.mxu1 %v873_v9 }
  0x43   :  { %749 = vmatmul.mubr.f32.vlgmr.msra.gmra.mxu1 %v879_v14 }
  0xea   :  { %v695_v38 = vpop.f32.mrf.mxu0 }
  0xec   :  { %v139_v39 = vpop.f32.mrf.mxu0 }
  0xef   :  { %v706_v40 = vpop.f32.mrf.mxu1 }
  0xf0   :  { %v247_v46 = vadd.f32 %v706_v40, %v695_v38 }
  0xf1   :  { %v240_v41 = vpop.f32.mrf.mxu1 }
  0xf2   :  { %v717_v42 = vpop.f32.mrf.mxu0  ;;  %v241_v44 = vadd.f32 %v240_v41, %v139_v39 }
  0xf3   :  { %v334_v50 = vadd.f32 %v717_v42, %v247_v46 }
  0xf4   :  { %v326_v45 = vpop.f32.mrf.mxu0 }
  0xf5   :  { %v327_v49 = vadd.f32 %v326_v45, %v241_v44 }
  0xf9   :  { %v728_v43 = vpop.f32.mrf.mxu1 }
  0xfa   :  { %v419_v53 = vadd.f32 %v728_v43, %v334_v50 }
  0xfb   :  { %v410_v47 = vpop.f32.mrf.mxu1 }
  0xfc   :  { %v739_v48 = vpop.f32.mrf.mxu0  ;;  %v411_v51 = vadd.f32 %v410_v47, %v327_v49 }
  0xfd   :  { %v508_v57 = vadd.f32 %v739_v48, %v419_v53 }
  0xfe   :  { %v501_v52 = vpop.f32.mrf.mxu0 }
  0xff   :  { %v502_v55 = vadd.f32 %v501_v52, %v411_v51 }
 0x103   :  { %v750_v54 = vpop.f32.mrf.mxu1 }
 0x104   :  { %v589_v60 = vadd.f32 %v750_v54, %v508_v57 }
 0x105   :  { %v582_v56 = vpop.f32.mrf.mxu1 }
 0x106   :  { %v583_v58 = vadd.f32 %v582_v56, %v502_v55  ;;  %v609_v62 = vadd.f32 %v648_v59, %v589_v60 }
 0x108   :  { %v608_v61 = vadd.f32 %v648_v59, %v583_v58 }
 0x10a   :  { %610 = vmax.xlane.f32.xlu0 %v608_v61 }
 0x10e   :  { %612 = vmax.xlane.f32.xlu0 %v609_v62 }
 0x193   :  { %v611_v63 = vpop.xlane.xlu0 %610 }
 0x194   :  { %v614_v0 = vsub.f32 %v608_v61, %v611_v63 }
 0x196   :  { %v616_v1 = vmul.f32 1.442695, %v614_v0 }
 0x197   :  { %v613_v2 = vpop.xlane.xlu0 %612 }
 0x198   :  { %756 = vpow2.f32 %v616_v1  ;;  %v615_v3 = vsub.f32 %v609_v62, %v613_v2 }
 0x19a   :  { %v618_v4 = vmul.f32 1.442695, %v615_v3 }
 0x19c   :  { %758 = vpow2.f32 %v618_v4 }
 0x1a5   :  { %v757_v5 = vpop.eup %756 }
 0x1a6   :  { %620 = vadd.xlane.f32.xlu1 %v757_v5 }
 0x1a9   :  { %v759_v6 = vpop.eup %758 }
 0x1aa   :  { %622 = vadd.xlane.f32.xlu1 %v759_v6 }
 0x22f   :  { %v621_v7 = vpop.xlane.xlu1 %620 }
 0x230   :  { %760 = vrcp.f32 %v621_v7 }
 0x233   :  { %v623_v8 = vpop.xlane.xlu1 %622 }
 0x234   :  { %762 = vrcp.f32 %v623_v8 }
 0x23d   :  { %v761_v9 = vpop.eup %760 }
 0x23e   :  { %v626_v10 = vmul.f32 %v761_v9, %v757_v5 }
 0x240   :  { %628 = vst [vmem:[#allocation8] sm:$0xff] %v626_v10 }
 0x241   :  { %v763_v11 = vpop.eup %762 }
 0x242   :  { %v627_v12 = vmul.f32 %v763_v11, %v759_v6 }
 0x244   :  { %629 = vst [vmem:[#allocation8 + $0x8] sm:$0xff] %v627_v12 }
 0x245   :  { %815 = shalt.err (!%p812_p0)
}
 0x246   :  { %641 = dma.vmem_to_hbm [thread:$0]  %s636_s24, 256, %s927_s3, [#allocation5], %s831_s15, %s831_s15, %s832_s16  }
 0x247   :  { %828 = dma.done.wait [#allocation5], 256  }
 0x248   :  { %829 = vsyncadd [#allocation5], 4294967040 }
 0x249   :  { %645 = vsyncpa [#allocation4], 1 }
 0x24a   :  { %646 = vsyncpa [#allocation7], 1 }
 0x24b   :  { %647 = vsyncpa [#allocation5], 1 }

</bundles_post_ra>
